<compile_context>
chip_gen: v5e
topology: v5e:2x2
jax: 0.10.0
libtpu: 0.0.40
codegen_flags: <defaults>
</compile_context>

<pallas_src>
import jax
import jax.numpy as jnp
from jax.experimental import pallas as pl
from jax.experimental.pallas import tpu as pltpu


# --------------------------------------------------------------------------- #
# Kernel
# --------------------------------------------------------------------------- #
def _make_channel_attention_kernel(hw_total: int, hw_tile: int, need_mask: bool):
    inv_hw = 1.0 / float(hw_total)

    def kernel(x_ref, w1t_ref, w2t_ref, o_ref, sum_acc, max_acc):
        # x_ref  : (Bt, C, HWt)  current spatial tile (input dtype)
        # w1t_ref: (C, Cr)       first 1x1 conv weight, pre-transposed
        # w2t_ref: (Cr, C)       second 1x1 conv weight, pre-transposed
        # o_ref  : (Bt, C)       sigmoid(fc(avg) + fc(max))
        # sum_acc, max_acc: (Bt, C) f32 scratch accumulators
        s = pl.program_id(1)
        n = pl.num_programs(1)

        @pl.when(s == 0)
        def _():
            sum_acc[...] = jnp.zeros_like(sum_acc)
            max_acc[...] = jnp.full_like(max_acc, -jnp.inf)

        def accumulate(x_sum_in, x_max_in):
            tile_sum = jnp.sum(x_sum_in, axis=-1, dtype=jnp.float32)      # (Bt, C)
            tile_max = jnp.max(x_max_in, axis=-1).astype(jnp.float32)     # (Bt, C)
            sum_acc[...] = sum_acc[...] + tile_sum
            max_acc[...] = jnp.maximum(max_acc[...], tile_max)

        if need_mask:
            # Unmasked fast path for all full tiles (no VALU masking work).
            @pl.when(s < n - 1)
            def _():
                x = x_ref[...]
                accumulate(x, x)

            # Masked path only on the final (partial) tile.
            @pl.when(s == n - 1)
            def _():
                x = x_ref[...]
                # (1, 1, HWt) iota broadcast by jnp.where — no full-tile iota.
                lane = jax.lax.broadcasted_iota(
                    jnp.int32, (1, 1, x.shape[-1]), dimension=2)
                valid = hw_total - s * hw_tile
                mask = lane < valid
                if jnp.issubdtype(x.dtype, jnp.floating):
                    neg = jnp.asarray(jnp.finfo(x.dtype).min, dtype=x.dtype)
                else:
                    neg = jnp.asarray(jnp.iinfo(x.dtype).min, dtype=x.dtype)
                accumulate(jnp.where(mask, x, jnp.zeros((), x.dtype)),
                           jnp.where(mask, x, neg))
        else:
            x = x_ref[...]
            accumulate(x, x)

        @pl.when(s == n - 1)
        def _():
            avg = sum_acc[...] * inv_hw                                   # (Bt, C)
            mx = max_acc[...]                                             # (Bt, C)
            bt = avg.shape[0]

            # Fused FC over both pooled paths: one matmul pair + one ReLU.
            stacked = jnp.concatenate([avg, mx], axis=0)                  # (2*Bt, C)
            w1t = w1t_ref[...].astype(jnp.float32)                        # (C, Cr)
            w2t = w2t_ref[...].astype(jnp.float32)                        # (Cr, C)
            h = jnp.maximum(
                jnp.dot(stacked, w1t, preferred_element_type=jnp.float32), 0.0)
            y = jnp.dot(h, w2t, preferred_element_type=jnp.float32)       # (2*Bt, C)
            out = y[:bt] + y[bt:]
            o_ref[...] = jax.nn.sigmoid(out).astype(o_ref.dtype)

    return kernel


# --------------------------------------------------------------------------- #
# Sizing heuristics (hardware aware)
# --------------------------------------------------------------------------- #
def _vmem_capacity_bytes() -> int:
    """Physical VMEM per TensorCore; conservative 64 MiB (v7x) fallback."""
    try:
        info = pltpu.get_tpu_info()
        cap = getattr(info, "vmem_capacity_bytes", None)
        if cap:
            return int(cap)
    except Exception:
        pass
    return 64 * 1024 * 1024


def _pick_bt(B: int, itemsize: int) -> int:
    """Batch tile: sublane/packing aligned, and >=2 parallel grid iterations
    when B allows (feeds both v7x TensorCores)."""
    sub = max(8, 8 * (4 // max(1, itemsize)))   # 8 (f32) / 16 (bf16) / 32 (int8)
    for bt in (4 * sub, 2 * sub, sub):
        if B % bt == 0 and B // bt >= 2:
            return bt
    if B % sub == 0:
        return sub
    if B % 8 == 0:
        return 8
    return B


def _pick_hw_tile(hw: int, bt: int, c: int, itemsize: int,
                  tile_budget_bytes: int) -> int:
    """Lane-dense HW tile (multiple of 128 or full HW) within the VMEM budget.
    Prefers a single-step (hw_tile == HW) reduction when it fits."""
    if hw <= 128:
        return hw                                   # full last dim: always legal
    lane_block_bytes = max(1, bt * c * itemsize) * 128
    budget_lanes = max(128, (tile_budget_bytes // lane_block_bytes) * 128)
    hw_pad = pl.cdiv(hw, 128) * 128
    if budget_lanes >= hw_pad:
        return hw                                   # one contiguous DMA, no mask
    return int(budget_lanes)


# --------------------------------------------------------------------------- #
# Wrapper
# --------------------------------------------------------------------------- #
def channel_attention(x_nchw, w1, w2, *, hw_tile=None):
    """x_nchw: (B, C, H, W); w1: (C//r, C); w2: (C, C//r). Returns (B, C, 1, 1)."""
    B, C, H, W = x_nchw.shape
    HW = H * W
    Cr = w1.shape[0]
    assert w1.shape == (Cr, C) and w2.shape == (C, Cr)

    x_flat = x_nchw.reshape(B, C, HW)
    # Pre-transpose weights so the kernel does plain row-major matmuls.
    w1t = jnp.transpose(w1)   # (C, Cr)
    w2t = jnp.transpose(w2)   # (Cr, C)

    itemsize = x_flat.dtype.itemsize
    bt = _pick_bt(B, itemsize)

    # ---- VMEM budgeting ---------------------------------------------------
    phys = _vmem_capacity_bytes()
    # Claim ~3/4 of physical VMEM (<= 96 MiB); covers v5e/v6e 128 MiB and the
    # 64 MiB v7x per-TC ceiling without starving the compiler.
    vmem_limit = min((phys * 3) // 4, 96 * 1024 * 1024)

    w_bytes = 2 * (w1.size * w1.dtype.itemsize + w2.size * w2.dtype.itemsize)
    fixed = (w_bytes                       # double-buffered resident weights
             + 2 * bt * C * 4              # f32 scratch accumulators
             + 2 * bt * C * itemsize       # double-buffered output block
             + (2 << 20))                  # compiler slack
    tile_cap = (12 << 20) if phys <= (64 << 20) else (20 << 20)
    tile_budget = max(1 << 20, min((vmem_limit - fixed) // 2, tile_cap))

    # ---- HW tiling ----------------------------------------------------------
    if hw_tile is None:
        hw_tile = _pick_hw_tile(HW, bt, C, itemsize, tile_budget)
    else:
        hw_tile = int(hw_tile)
        if HW <= 128 or hw_tile >= HW:
            hw_tile = HW
        else:
            hw_tile = max(128, (hw_tile // 128) * 128)   # legalize to mult of 128
            if hw_tile >= HW:
                hw_tile = HW
    need_mask = hw_tile < HW and (HW % hw_tile) != 0

    grid = (B // bt, pl.cdiv(HW, hw_tile))
    kernel = _make_channel_attention_kernel(HW, hw_tile, need_mask)

    # Make sure the claimed limit covers the actual footprint (user overrides).
    need = 2 * bt * C * hw_tile * itemsize + fixed
    vmem_limit_bytes = int(min(max(vmem_limit, need + (4 << 20)),
                               max(phys - (4 << 20), 32 << 20)))

    bytes_accessed = (x_flat.size * itemsize
                      + w1.size * w1.dtype.itemsize
                      + w2.size * w2.dtype.itemsize
                      + B * C * itemsize)
    flops = 2 * B * C * HW + 2 * (2 * B) * C * Cr * 2

    out = pl.pallas_call(
        kernel,
        out_shape=jax.ShapeDtypeStruct((B, C), x_nchw.dtype),
        grid_spec=pltpu.PrefetchScalarGridSpec(
            num_scalar_prefetch=0,
            grid=grid,
            in_specs=[
                pl.BlockSpec((bt, C, hw_tile), lambda b, s: (b, 0, s)),
                pl.BlockSpec((C, Cr), lambda b, s: (0, 0)),   # resident weights
                pl.BlockSpec((Cr, C), lambda b, s: (0, 0)),   # resident weights
            ],
            out_specs=pl.BlockSpec((bt, C), lambda b, s: (b, 0)),
            scratch_shapes=[
                pltpu.VMEM((bt, C), jnp.float32),   # running sum
                pltpu.VMEM((bt, C), jnp.float32),   # running max
            ],
        ),
        compiler_params=pltpu.CompilerParams(
            dimension_semantics=("parallel", "arbitrary"),
            vmem_limit_bytes=vmem_limit_bytes,
        ),
        cost_estimate=pl.CostEstimate(
            flops=flops, transcendentals=B * C, bytes_accessed=bytes_accessed),
    )(x_flat, w1t, w2t)

    return out.reshape(B, C, 1, 1)


# --------------------------------------------------------------------------- #
# Self-test
# --------------------------------------------------------------------------- #
if __name__ == "__main__":
    # Ratio-compatible small shapes: in_channels=32, ratio=16 -> hidden=2.
    B, C, H, W = 2, 32, 16, 16
    ratio = 16
    Cr = C // ratio

    key = jax.random.PRNGKey(0)
    kx, k1, k2, kx2 = jax.random.split(key, 4)

    x = jax.random.normal(kx, (B, C, H, W), dtype=jnp.float32)
    w1 = jax.random.normal(k1, (Cr, C), dtype=jnp.float32) * 0.1   # Conv2d(C, Cr, 1), no bias
    w2 = jax.random.normal(k2, (C, Cr), dtype=jnp.float32) * 0.1   # Conv2d(Cr, C, 1), no bias

    # Pure-JAX reference (same semantics as the torch module).
    def ref(x, w1, w2):
        avg = jnp.mean(x, axis=(2, 3))
        mx = jnp.max(x, axis=(2, 3))
        def fc(v):
            return jnp.maximum(v @ w1.T, 0.0) @ w2.T
        return jax.nn.sigmoid(fc(avg) + fc(mx)).reshape(x.shape[0], x.shape[1], 1, 1)

    y_ref = ref(x, w1, w2)

    # 1) Default (auto-sized): hw_tile == HW, single-step reduction path.
    y = channel_attention(x, w1, w2)
    jax.block_until_ready(y)
    assert y.shape == (B, C, 1, 1)
    assert jnp.allclose(y, y_ref, atol=1e-5, rtol=1e-5)

    # 2) Forced multi-step HW grid (exercises init/accumulate/finalize path).
    y2 = channel_attention(x, w1, w2, hw_tile=128)
    jax.block_until_ready(y2)
    assert jnp.allclose(y2, y_ref, atol=1e-5, rtol=1e-5)

    # 3) Non-divisible HW (15x15=225) with a forced 128 tile: exercises the
    #    masked-last-tile path that is now gated behind pl.when.
    x_odd = jax.random.normal(kx2, (B, C, 15, 15), dtype=jnp.float32)
    y3 = channel_attention(x_odd, w1, w2, hw_tile=128)
    jax.block_until_ready(y3)
    assert jnp.allclose(y3, ref(x_odd, w1, w2), atol=1e-5, rtol=1e-5)

    print("KERNEL_OK")
</pallas_src>

<mosaic_0001>
module attributes {stable_mosaic.version = 11 : i64} {
  func.func @kernel(%arg0: i32, %arg1: i32, %arg2: memref<2x32x256xf32, #tpu.memory_space<vmem>>, %arg3: memref<32x2xf32, #tpu.memory_space<vmem>>, %arg4: memref<2x32xf32, #tpu.memory_space<vmem>>, %arg5: memref<2x32xf32, #tpu.memory_space<vmem>>, %arg6: memref<2x32xf32, #tpu.memory_space<vmem>>, %arg7: memref<2x32xf32, #tpu.memory_space<vmem>>) attributes {dimension_semantics = [#tpu.dimension_semantics<parallel>, #tpu.dimension_semantics<arbitrary>], iteration_bounds = array<i64: 1, 1>, scalar_prefetch = 0 : i64, scratch_operands = 2 : i64, tpu.core_type = #tpu.core_type<tc>, window_params = [{transform_indices = @transform_0, window_bounds = array<i64: 2, 32, 256>}, {pipeline_mode = #tpu.pipeline_mode<synchronous>, transform_indices = @transform_1, window_bounds = array<i64: 32, 2>}, {pipeline_mode = #tpu.pipeline_mode<synchronous>, transform_indices = @transform_2, window_bounds = array<i64: 2, 32>}, {transform_indices = @transform_3, window_bounds = array<i64: 2, 32>}]} {
    %c0_i32 = arith.constant 0 : i32
    %0 = arith.cmpi eq, %arg1, %c0_i32 : i32
    %1 = arith.extui %0 : i1 to i32
    %c0_i32_0 = arith.constant 0 : i32
    %2 = arith.cmpi ne, %1, %c0_i32_0 : i32
    scf.if %2 {
      %cst_14 = arith.constant 0.000000e+00 : f32
      %15 = vector.broadcast %cst_14 : f32 to vector<2x32xf32>
      %c0_15 = arith.constant 0 : index
      %c0_16 = arith.constant 0 : index
      %16 = vector.load %arg6[%c0_15, %c0_16] : memref<2x32xf32, #tpu.memory_space<vmem>>, vector<2x32xf32>
      tpu.vector_store %arg6[%c0_15, %c0_16], %15 {strides = array<i32>} : memref<2x32xf32, #tpu.memory_space<vmem>>, vector<2x32xf32>,
      %cst_17 = arith.constant 0xFF800000 : f32
      %17 = vector.broadcast %cst_17 : f32 to vector<2x32xf32>
      %c0_18 = arith.constant 0 : index
      %c0_19 = arith.constant 0 : index
      %18 = vector.load %arg7[%c0_18, %c0_19] : memref<2x32xf32, #tpu.memory_space<vmem>>, vector<2x32xf32>
      tpu.vector_store %arg7[%c0_18, %c0_19], %17 {strides = array<i32>} : memref<2x32xf32, #tpu.memory_space<vmem>>, vector<2x32xf32>,
    } else {
    }
    %c0 = arith.constant 0 : index
    %c0_1 = arith.constant 0 : index
    %c0_2 = arith.constant 0 : index
    %3 = vector.load %arg2[%c0, %c0_1, %c0_2] : memref<2x32x256xf32, #tpu.memory_space<vmem>>, vector<2x32x256xf32>
    %cst = arith.constant dense<0.000000e+00> : vector<2x32xf32>
    %4 = vector.multi_reduction <add>, %3, %cst [2] : vector<2x32x256xf32> to vector<2x32xf32>
    %cst_3 = arith.constant dense<0xFF800000> : vector<2x32xf32>
    %5 = vector.multi_reduction <maximumf>, %3, %cst_3 [2] : vector<2x32x256xf32> to vector<2x32xf32>
    %c0_4 = arith.constant 0 : index
    %c0_5 = arith.constant 0 : index
    %6 = vector.load %arg6[%c0_4, %c0_5] : memref<2x32xf32, #tpu.memory_space<vmem>>, vector<2x32xf32>
    %7 = arith.addf %6, %4 : vector<2x32xf32>
    %c0_6 = arith.constant 0 : index
    %c0_7 = arith.constant 0 : index
    %8 = vector.load %arg6[%c0_6, %c0_7] : memref<2x32xf32, #tpu.memory_space<vmem>>, vector<2x32xf32>
    tpu.vector_store %arg6[%c0_6, %c0_7], %7 {strides = array<i32>} : memref<2x32xf32, #tpu.memory_space<vmem>>, vector<2x32xf32>,
    %c0_8 = arith.constant 0 : index
    %c0_9 = arith.constant 0 : index
    %9 = vector.load %arg7[%c0_8, %c0_9] : memref<2x32xf32, #tpu.memory_space<vmem>>, vector<2x32xf32>
    %10 = arith.maximumf %9, %5 : vector<2x32xf32>
    %c0_10 = arith.constant 0 : index
    %c0_11 = arith.constant 0 : index
    %11 = vector.load %arg7[%c0_10, %c0_11] : memref<2x32xf32, #tpu.memory_space<vmem>>, vector<2x32xf32>
    tpu.vector_store %arg7[%c0_10, %c0_11], %10 {strides = array<i32>} : memref<2x32xf32, #tpu.memory_space<vmem>>, vector<2x32xf32>,
    %c0_i32_12 = arith.constant 0 : i32
    %12 = arith.cmpi eq, %arg1, %c0_i32_12 : i32
    %13 = arith.extui %12 : i1 to i32
    %c0_i32_13 = arith.constant 0 : i32
    %14 = arith.cmpi ne, %13, %c0_i32_13 : i32
    scf.if %14 {
      %c0_14 = arith.constant 0 : index
      %c0_15 = arith.constant 0 : index
      %15 = vector.load %arg6[%c0_14, %c0_15] : memref<2x32xf32, #tpu.memory_space<vmem>>, vector<2x32xf32>
      %cst_16 = arith.constant 3.906250e-03 : f32
      %16 = vector.broadcast %cst_16 : f32 to vector<2x32xf32>
      %17 = arith.mulf %15, %16 : vector<2x32xf32>
      %c0_17 = arith.constant 0 : index
      %c0_18 = arith.constant 0 : index
      %18 = vector.load %arg7[%c0_17, %c0_18] : memref<2x32xf32, #tpu.memory_space<vmem>>, vector<2x32xf32>
      %19 = tpu.concatenate %17, %18 in 0 : vector<2x32xf32>, vector<2x32xf32> -> vector<4x32xf32>
      %c0_19 = arith.constant 0 : index
      %c0_20 = arith.constant 0 : index
      %20 = vector.load %arg3[%c0_19, %c0_20] : memref<32x2xf32, #tpu.memory_space<vmem>>, vector<32x2xf32>
      %c0_21 = arith.constant 0 : index
      %c0_22 = arith.constant 0 : index
      %21 = vector.load %arg4[%c0_21, %c0_22] : memref<2x32xf32, #tpu.memory_space<vmem>>, vector<2x32xf32>
      %cst_23 = arith.constant dense<0.000000e+00> : vector<4x2xf32>
      %22 = tpu.matmul %19, %20, %cst_23 {dimension_numbers = #tpu.dot_dimension_numbers<[1], [0], [0], [1], [0, 0, 1, 1], [], []>} : vector<4x32xf32>, vector<32x2xf32>, vector<4x2xf32> -> vector<4x2xf32>
      %cst_24 = arith.constant 0.000000e+00 : f32
      %23 = vector.broadcast %cst_24 : f32 to vector<4x2xf32>
      %24 = arith.maximumf %22, %23 : vector<4x2xf32>
      %cst_25 = arith.constant dense<0.000000e+00> : vector<4x32xf32>
      %25 = tpu.matmul %24, %21, %cst_25 {dimension_numbers = #tpu.dot_dimension_numbers<[1], [0], [0], [1], [0, 0, 1, 1], [], []>} : vector<4x2xf32>, vector<2x32xf32>, vector<4x32xf32> -> vector<4x32xf32>
      %26 = vector.extract_strided_slice %25 {offsets = [0, 0], sizes = [2, 32], strides = [1, 1]} : vector<4x32xf32> to vector<2x32xf32>
      %27 = vector.extract_strided_slice %25 {offsets = [2, 0], sizes = [2, 32], strides = [1, 1]} : vector<4x32xf32> to vector<2x32xf32>
      %28 = arith.addf %26, %27 : vector<2x32xf32>
      %29 = arith.negf %28 : vector<2x32xf32>
      %30 = math.exp %29 : vector<2x32xf32>
      %cst_26 = arith.constant 1.000000e+00 : f32
      %31 = vector.broadcast %cst_26 : f32 to vector<2x32xf32>
      %32 = arith.addf %31, %30 : vector<2x32xf32>
      %33 = arith.divf %31, %32 : vector<2x32xf32>
      %c0_27 = arith.constant 0 : index
      %c0_28 = arith.constant 0 : index
      %34 = vector.load %arg5[%c0_27, %c0_28] : memref<2x32xf32, #tpu.memory_space<vmem>>, vector<2x32xf32>
      tpu.vector_store %arg5[%c0_27, %c0_28], %33 {strides = array<i32>} : memref<2x32xf32, #tpu.memory_space<vmem>>, vector<2x32xf32>,
    } else {
    }
    return
  }
  func.func @transform_0(%arg0: i32, %arg1: i32) -> (i32, i32, i32) {
    %c0_i32 = arith.constant 0 : i32
    %c0_i32_0 = arith.constant 0 : i32
    return %arg0, %c0_i32, %arg1 : i32, i32, i32
  }
  func.func @transform_1(%arg0: i32, %arg1: i32) -> (i32, i32) {
    %c0_i32 = arith.constant 0 : i32
    %c0_i32_0 = arith.constant 0 : i32
    %c0_i32_1 = arith.constant 0 : i32
    return %c0_i32, %c0_i32_0 : i32, i32
  }
  func.func @transform_2(%arg0: i32, %arg1: i32) -> (i32, i32) {
    %c0_i32 = arith.constant 0 : i32
    %c0_i32_0 = arith.constant 0 : i32
    %c0_i32_1 = arith.constant 0 : i32
    return %c0_i32, %c0_i32_0 : i32, i32
  }
  func.func @transform_3(%arg0: i32, %arg1: i32) -> (i32, i32) {
    %c0_i32 = arith.constant 0 : i32
    %c0_i32_0 = arith.constant 0 : i32
    return %arg0, %c0_i32 : i32, i32
  }
}

</mosaic_0001>

<bundles_post_ra>
// kernel: tpu_custom_call.1
= control target key start
LH: loop header
LB: loop body
LE: loop exit
PB: predicated region body
PF: predicated region fallthrough
CT: control target
= control target key end

     0   :  { %8 = vsyncpa [#allocation5], 0  ;;  %s407_s0 = inlined_call_operand.hbm [shape: f32[2,32,256], index: 0, kind: input, shape index: {}]   ;;  %s408_s1 = inlined_call_operand.vmem [shape: f32[32,2], index: 1, kind: input, shape index: {}]   ;;  %s409_s2 = inlined_call_operand.vmem [shape: f32[2,32], index: 2, kind: input, shape index: {}]   ;;  %s410_s3 = inlined_call_operand.hbm [shape: f32[2,32], index: 3, kind: output, shape index: {}]  }
   0x1   :  { %9 = vsyncpa [#allocation6], 0  ;;  %s14_s14 = sshll.u32 %s407_s0, 4  ;;  %s341_s15 = smov [#allocation4]   ;;  %s15_s14 = int_to_ptr.hbm [resolvable:$true] %s14_s14 }
   0x2   :  { %s16_s16 = sshll.u32 %s341_s15, 4  ;;  %s342_s17 = smov 256   ;;  %s17_s16 = int_to_ptr.vmem [resolvable:$true] %s16_s16 }
   0x3   :  { %s343_s18 = smov 16  }
   0x4   :  { %22 = dma.hbm_to_vmem [thread:$0]  %s15_s14, 2048, %s17_s16, [#allocation5], %s342_s17, %s342_s17, %s343_s18  }
   0x5   :  { %337 = dma.done.wait [#allocation5], 2048  }
   0x6   :  { %338 = vsyncadd [#allocation5], 4294965248  ;;  %v46_v0 = vld [vmem:[#allocation4 + $0x40] sm:$0xff]  ;;  %v47_v1 = vld [vmem:[#allocation4 + $0x48] sm:$0xff]  ;;  %vm35_vm0 = vcmask 254976   ;;  %v344_v32 = vmov 0.0   ;;  %v111_v46 = vlaneseq }
   0x7   :  { %v38_v2 = vld [vmem:[#allocation4] sm:$0xff]  ;;  %v66_v3 = vadd.f32 %v47_v1, %v46_v0  ;;  %v39_v4 = vld [vmem:[#allocation4 + $0x8] sm:$0xff]  ;;  %v48_v7 = vld [vmem:[#allocation4 + $0x50] sm:$0xff]  ;;  %v90_v18 = vmax.f32 %v46_v0, %v47_v1  ;;  %36 = vst.msk [vmem:[#allocation2] sm:$0x3] %vm35_vm0, %v344_v32  ;;  %v345_v36 = vmov -inf  }
   0x8   :  { %v78_v5 = vmax.f32 %v38_v2, %v39_v4  ;;  %v54_v6 = vadd.f32 %v39_v4, %v38_v2  ;;  %v49_v8 = vld [vmem:[#allocation4 + $0x58] sm:$0xff]  ;;  %v40_v9 = vld [vmem:[#allocation4 + $0x10] sm:$0xff]  ;;  %v42_v14 = vld [vmem:[#allocation4 + $0x20] sm:$0xff]  ;;  %37 = vst.msk [vmem:[#allocation3] sm:$0x3] %vm35_vm0, %v345_v36  ;;  %v112_v48 = vand.u32 127, %v111_v46 }
   0x9   :  { %67 = vadd.xlane.f32.xlu1 %v66_v3  ;;  %v41_v10 = vld [vmem:[#allocation4 + $0x18] sm:$0xff]  ;;  %v69_v11 = vadd.f32 %v49_v8, %v48_v7  ;;  %v43_v15 = vld [vmem:[#allocation4 + $0x28] sm:$0xff]  ;;  %v93_v16 = vmax.f32 %v48_v7, %v49_v8  ;;  %v50_v19 = vld [vmem:[#allocation4 + $0x60] sm:$0xff]  ;;  %vm116_vm1 = vcmask 130112   ;;  %vm120_vm2 = vcmask 195712   ;;  %s265_s30 = sshll.u32 %s410_s3, 4  ;;  %s266_s30 = int_to_ptr.hbm [resolvable:$true] %s265_s30 }
   0xa   :  { %79 = vmax.xlane.f32.xlu2 %v78_v5  ;;  %55 = vadd.xlane.f32.xlu0 %v54_v6  ;;  %v81_v12 = vmax.f32 %v40_v9, %v41_v10  ;;  %v57_v13 = vadd.f32 %v41_v10, %v40_v9  ;;  %v60_v17 = vadd.f32 %v43_v15, %v42_v14  ;;  %v51_v20 = vld [vmem:[#allocation4 + $0x68] sm:$0xff]  ;;  %v52_v24 = vld [vmem:[#allocation4 + $0x70] sm:$0xff]  ;;  %v53_v25 = vld [vmem:[#allocation4 + $0x78] sm:$0xff]  ;;  %v114_v50 = vadd.s32 4294967288, %v112_v48 }
   0xb   :  { %v84_v21 = vmax.f32 %v42_v14, %v43_v15  ;;  %v96_v22 = vmax.f32 %v50_v19, %v51_v20  ;;  %v72_v23 = vadd.f32 %v51_v20, %v50_v19  ;;  %v44_v26 = vld [vmem:[#allocation4 + $0x30] sm:$0xff]  ;;  %v45_v27 = vld [vmem:[#allocation4 + $0x38] sm:$0xff]  ;;  %v75_v28 = vadd.f32 %v53_v25, %v52_v24  ;;  %v178_v45 = vld [vmem:[%s408_s1 + $0x8] sm:$0xff] }
   0xc   :  { %v87_v29 = vmax.f32 %v44_v26, %v45_v27  ;;  %v63_v30 = vadd.f32 %v45_v27, %v44_v26  ;;  %v99_v31 = vmax.f32 %v52_v24, %v53_v25  ;;  %v180_v41 = vld [vmem:[%s408_s1 + $0x18] sm:$0xff]  ;;  %v179_v42 = vld [vmem:[%s408_s1 + $0x10] sm:$0xff]  ;;  %v177_v47 = vld [vmem:[%s408_s1] sm:$0xff]  ;;  %v118_v52 = vadd.s32 4294967280, %v112_v48 }
   0xd   :  { %198 = vmatpush.msra.mxu0 %v180_v41  ;;  %v122_v56 = vadd.s32 4294967272, %v112_v48  ;;  %vm124_vm3 = vcmask 261312   ;;  %vm133_vm4 = vcmask 1041409   ;;  %vm175_vm5 = vcmask 1041408  }
   0xe   :  { %v102_v6 = vld [vmem:[#allocation2] sm:$0x3]  ;;  %vm182_vm6 = vcmask 261120   ;;  %vm207_vm7 = vcmask 15360  }
   0xf   :  { %199 = vmatpush.msra.mxu0 %v179_v42  ;;  %v139_v24 = vld [vmem:[#allocation3] sm:$0x3] }
  0x11   :  { %70 = vadd.xlane.f32.xlu1 %v69_v11  ;;  %200 = vmatpush.msra.mxu0 %v178_v45 }
  0x12   :  { %82 = vmax.xlane.f32.xlu2 %v81_v12  ;;  %58 = vadd.xlane.f32.xlu0 %v57_v13 }
  0x13   :  { %201 = vmatpush.msra.mxu0 %v177_v47 }
  0x19   :  { %94 = vmax.xlane.f32.xlu1 %v93_v16 }
  0x1a   :  { %61 = vadd.xlane.f32.xlu2 %v60_v17  ;;  %91 = vmax.xlane.f32.xlu0 %v90_v18 }
  0x21   :  { %85 = vmax.xlane.f32.xlu1 %v84_v21 }
  0x22   :  { %97 = vmax.xlane.f32.xlu2 %v96_v22  ;;  %73 = vadd.xlane.f32.xlu0 %v72_v23 }
  0x29   :  { %76 = vadd.xlane.f32.xlu1 %v75_v28 }
  0x2a   :  { %88 = vmax.xlane.f32.xlu2 %v87_v29  ;;  %64 = vadd.xlane.f32.xlu0 %v63_v30 }
  0x32   :  { %100 = vmax.xlane.f32.xlu0 %v99_v31 }
  0x7c   :  { %v68_v33 = vpop.xlane.xlu1 %67 }
  0x7d   :  { %v80_v34 = vpop.xlane.xlu2 %79  ;;  %v56_v35 = vpop.xlane.xlu0 %55  ;;  %v126_v54 = vperm.slane %v68_v33, %v112_v48 }
  0x7e   :  { %v113_v60 = vperm.slane %v56_v35, %v112_v48  ;;  %v148_v8 = vperm.slane %v80_v34, %v112_v48  ;;  %v181_v34 = vld [vmem:[%s409_s2] sm:$0x3]  ;;  %s346_s2 = smov [#allocation7]  }
  0x7f   :  { %276 = vmatpush.msk.msra.mxu1 %vm175_vm5, %v181_v34  ;;  %s263_s27 = sshll.u32 %s346_s2, 4  ;;  %s264_s27 = int_to_ptr.vmem [resolvable:$true] %s263_s27 }
  0x84   :  { %v71_v37 = vpop.xlane.xlu1 %70 }
  0x85   :  { %v83_v38 = vpop.xlane.xlu2 %82  ;;  %v59_v39 = vpop.xlane.xlu0 %58  ;;  %v127_v55 = vperm.slane %v71_v37, %v114_v50 }
  0x86   :  { %v115_v57 = vperm.slane %v59_v39, %v114_v50  ;;  %v149_v11 = vperm.slane %v83_v38, %v114_v50 }
  0x87   :  { %v128_v62 = vsel %vm116_vm1, %v127_v55, %v126_v54 }
  0x88   :  { %v117_v1 = vsel %vm116_vm1, %v115_v57, %v113_v60  ;;  %v150_v19 = vsel %vm116_vm1, %v149_v11, %v148_v8 }
  0x8c   :  { %v95_v40 = vpop.xlane.xlu1 %94 }
  0x8d   :  { %v62_v43 = vpop.xlane.xlu2 %61  ;;  %v92_v44 = vpop.xlane.xlu0 %91  ;;  %v156_v12 = vperm.slane %v95_v40, %v114_v50 }
  0x8e   :  { %v119_v59 = vperm.slane %v62_v43, %v118_v52  ;;  %v155_v13 = vperm.slane %v92_v44, %v112_v48 }
  0x90   :  { %v121_v4 = vsel %vm120_vm2, %v119_v59, %v117_v1  ;;  %v157_v20 = vsel %vm116_vm1, %v156_v12, %v155_v13 }
  0x94   :  { %v86_v49 = vpop.xlane.xlu1 %85 }
  0x95   :  { %v74_v51 = vpop.xlane.xlu0 %73  ;;  %v98_v53 = vpop.xlane.xlu2 %97  ;;  %v151_v15 = vperm.slane %v86_v49, %v118_v52 }
  0x96   :  { %v129_v58 = vperm.slane %v74_v51, %v118_v52  ;;  %v158_v16 = vperm.slane %v98_v53, %v118_v52 }
  0x97   :  { %v152_v22 = vsel %vm120_vm2, %v151_v15, %v150_v19 }
  0x98   :  { %v130_v2 = vsel %vm120_vm2, %v129_v58, %v128_v62  ;;  %v159_v23 = vsel %vm120_vm2, %v158_v16, %v157_v20 }
  0x9c   :  { %v77_v61 = vpop.xlane.xlu1 %76 }
  0x9d   :  { %v131_v63 = vperm.slane %v77_v61, %v122_v56  ;;  %v65_v0 = vpop.xlane.xlu0 %64  ;;  %v89_v9 = vpop.xlane.xlu2 %88 }
  0x9e   :  { %v123_v3 = vperm.slane %v65_v0, %v122_v56  ;;  %v153_v17 = vperm.slane %v89_v9, %v122_v56 }
  0x9f   :  { %v132_v5 = vsel %vm124_vm3, %v131_v63, %v130_v2 }
  0xa0   :  { %v125_v7 = vsel %vm124_vm3, %v123_v3, %v121_v4  ;;  %v154_v25 = vsel %vm124_vm3, %v153_v17, %v152_v22 }
  0xa1   :  { %v134_v10 = vsel %vm133_vm4, %v132_v5, %v125_v7 }
  0xa2   :  { %v136_v14 = vadd.f32 %v134_v10, %v102_v6 }
  0xa4   :  { %138 = vst.msk [vmem:[#allocation2] sm:$0x3] %vm35_vm0, %v136_v14 }
  0xa5   :  { %v101_v18 = vpop.xlane.xlu0 %100 }
  0xa6   :  { %v160_v21 = vperm.slane %v101_v18, %v122_v56 }
  0xa8   :  { %v161_v26 = vsel %vm124_vm3, %v160_v21, %v159_v23 }
  0xa9   :  { %v162_v27 = vsel %vm133_vm4, %v161_v26, %v154_v25 }
  0xaa   :  { %v164_v28 = vmax.f32 %v139_v24, %v162_v27 }
  0xab   :  { %v169_v29 = vld [vmem:[#allocation2] sm:$0x3] }
  0xac   :  { %165 = vst.msk [vmem:[#allocation3] sm:$0x3] %vm35_vm0, %v164_v28  ;;  %v170_v31 = vmul.f32 0.00390625, %v169_v29 }
  0xb3   :  { %v171_v30 = vld [vmem:[#allocation3] sm:$0x3] }
  0xb4   :  { %v173_v32 = vrot.slane %v171_v30, 6 }
  0xb6   :  { %v176_v33 = vsel %vm175_vm5, %v170_v31, %v173_v32 }
  0xb7   :  { %275 = vmatmul.msk.f32.vlgmr.msra.gmra.mxu0 %vm182_vm6, %v176_v33 }
 0x134   :  { %v203_v35 = vpop.f32.mrf.mxu0 }
 0x135   :  { %v206_v36 = vmax.f32 %v203_v35, 0.0 }
 0x137   :  { %277 = vmatmul.msk.f32.vlgmr.msra.gmra.mxu1 %vm207_vm7, %v206_v36 }
 0x1b4   :  { %v231_v37 = vpop.f32.mrf.mxu1 }
 0x1b5   :  { %v235_v38 = vrot.slane %v231_v37, 2 }
 0x1b7   :  { %v237_v39 = vadd.f32 %v235_v38, %v231_v37 }
 0x1b9   :  { %v278_v40 = vmul.f32 -1.442695, %v237_v39 }
 0x1bb   :  { %285 = vpow2.f32 %v278_v40 }
 0x1c1   :  { %v286_v41 = vpop.eup %285 }
 0x1c2   :  { %v241_v42 = vadd.f32 1.0, %v286_v41 }
 0x1c4   :  { %287 = vrcp.f32 %v241_v42  ;;  %v253_v46 = vand.u32 2147483648, %v241_v42  ;;  %v251_v48 = vand.u32 2147483647, %v241_v42  ;;  %vm247_vm9 = vweird.f32 %v241_v42 }
 0x1c6   :  { %v254_v50 = vor.u32 1.1754944e-38, %v253_v46  ;;  %vm252_vm11 = vcmp.eq.f32.partialorder %v251_v48, 8.507059e+37 }
 0x1ca   :  { %v288_v43 = vpop.eup %287 }
 0x1cb   :  { %v243_v44 = vmul.f32 %v288_v43, %v241_v42  ;;  %vm248_vm8 = vweird.f32 %v288_v43 }
 0x1cc   :  { %vm249_vm10 = vmor %vm247_vm9, %vm248_vm8 }
 0x1cd   :  { %v244_v45 = vsub.f32 1.0, %v243_v44 }
 0x1cf   :  { %v245_v47 = vmul.f32 %v288_v43, %v244_v45 }
 0x1d1   :  { %v246_v49 = vadd.f32 %v288_v43, %v245_v47 }
 0x1d3   :  { %v250_v51 = vsel %vm249_vm10, %v288_v43, %v246_v49 }
 0x1d4   :  { %v255_v52 = vsel %vm252_vm11, %v254_v50, %v250_v51 }
 0x1d5   :  { %257 = vst.msk [vmem:[#allocation7] sm:$0x3] %vm35_vm0, %v255_v52 }
 0x1d6   :  { %268 = dma.vmem_to_hbm [thread:$0]  %s264_s27, 32, %s266_s30, [#allocation6]  }
 0x1d7   :  { %339 = dma.done.wait [#allocation6], 32  }
 0x1d8   :  { %340 = vsyncadd [#allocation6], 4294967264 }
 0x1d9   :  { %273 = vsyncpa [#allocation5], 1 }
 0x1da   :  { %274 = vsyncpa [#allocation6], 1 }

</bundles_post_ra>
